<compile_context>
chip_gen: v6e
topology: v6e:2x2x1
jax: 0.10.0
libtpu: 0.0.40
codegen_flags: <defaults>
</compile_context>

<pallas_src>
import numpy as np
import jax
import jax.numpy as jnp
from jax.experimental import pallas as pl
from jax.experimental.pallas import tpu as pltpu

EMB_DIM = 32        # PNNLayer emb_dim default
ANCHOR_NUM = 32     # PNNLayer anchor_set_num default
HEADS = 4           # GFormer GTLayer heads
HEAD_DIM = EMB_DIM // HEADS
VMEM_LIMIT = 48 * 1024 * 1024   # ~75% of v7x's 64 MiB physical VMEM


def _round_up(x, m):
    return ((x + m - 1) // m) * m


# ----------------------------- PNN layer kernel -----------------------------
def _pnn_kernel(dists_ref, emb_ref, anc_ref, wt_ref, wb_ref, b_ref, out_ref):
    a = dists_ref.shape[-1]
    # Exact collapse of: mean_a(cat([anc_a * dist_a, emb]) @ W_hidden + b)
    #   == ((dists @ anc) / A) @ W_top + emb @ W_bot + b
    agg = jnp.dot(dists_ref[...], anc_ref[...],
                  preferred_element_type=jnp.float32) * (1.0 / a)     # [TN, D]
    h = jnp.dot(agg.astype(wt_ref.dtype), wt_ref[...],
                preferred_element_type=jnp.float32)                   # [TN, D]
    h = h + jnp.dot(emb_ref[...], wb_ref[...],
                    preferred_element_type=jnp.float32)
    out_ref[...] = (h + b_ref[...]).astype(out_ref.dtype)


def pnn_forward(dists, embeds, anchor_ids, w_hidden, b_hidden, *, tn=1024):
    n, d = embeds.shape
    a = dists.shape[-1]
    tn = min(tn, _round_up(n, 8))
    n_pad = _round_up(n, tn)
    pad = n_pad - n
    dists_p = jnp.pad(jnp.asarray(dists, jnp.float32),
                      ((0, pad), (0, 0))).astype(jnp.bfloat16)
    emb_p = jnp.pad(embeds, ((0, pad), (0, 0))).astype(jnp.bfloat16)
    anchors = embeds[anchor_ids].astype(jnp.bfloat16)                 # gather (glue)
    w_top = w_hidden[:d].astype(jnp.bfloat16)                         # message part
    w_bot = w_hidden[d:].astype(jnp.bfloat16)                         # self-feature part
    out = pl.pallas_call(
        _pnn_kernel,
        out_shape=jax.ShapeDtypeStruct((n_pad, d), jnp.bfloat16),
        grid=(n_pad // tn,),
        in_specs=[
            pl.BlockSpec((tn, a), lambda i: (i, 0)),
            pl.BlockSpec((tn, d), lambda i: (i, 0)),
            pl.BlockSpec((a, d), lambda i: (0, 0)),
            pl.BlockSpec((d, d), lambda i: (0, 0)),
            pl.BlockSpec((d, d), lambda i: (0, 0)),
            pl.BlockSpec((1, d), lambda i: (0, 0)),
        ],
        out_specs=pl.BlockSpec((tn, d), lambda i: (i, 0)),
        compiler_params=pltpu.CompilerParams(
            dimension_semantics=("parallel",),
            vmem_limit_bytes=VMEM_LIMIT),
    )(dists_p, emb_p, anchors, w_top, w_bot, b_hidden)
    return out[:n]


# --------------------- GT layer per-edge attention kernel --------------------
def _gt_edge_kernel(row_ref, col_ref, wq_ref, wkv_ref, mask_ref, exp_ref, v_ref):
    d = row_ref.shape[-1]
    q = jnp.dot(row_ref[...], wq_ref[...],
                preferred_element_type=jnp.float32)                   # [TE, D]
    kv = jnp.dot(col_ref[...], wkv_ref[...],
                 preferred_element_type=jnp.float32)                  # [TE, 2D]
    k = kv[:, :d]
    v = kv[:, d:]
    qk = q * k                                                        # [TE, D]
    # Per-head reduction as an MXU matmul against the block-diagonal head
    # mask, producing lane-dense [HEADS, TE] logits directly.
    att = jax.lax.dot_general(mask_ref[...], qk,
                              dimension_numbers=(((1,), (1,)), ((), ())),
                              preferred_element_type=jnp.float32)     # [H, TE]
    att = jnp.clip(att, -10.0, 10.0)
    exp_ref[...] = jnp.exp(att)
    v_ref[...] = v


def gt_edge_forward(row_emb, col_emb, wq, wkv, head_mask, *, te=4096):
    e, d = row_emb.shape
    heads = head_mask.shape[0]
    te = min(te, _round_up(e, 128))
    e_pad = _round_up(e, te)
    pad = e_pad - e
    row_p = jnp.pad(row_emb, ((0, pad), (0, 0)))
    col_p = jnp.pad(col_emb, ((0, pad), (0, 0)))
    exp_he, v = pl.pallas_call(
        _gt_edge_kernel,
        out_shape=(jax.ShapeDtypeStruct((heads, e_pad), jnp.float32),
                   jax.ShapeDtypeStruct((e_pad, d), jnp.float32)),
        grid=(e_pad // te,),
        in_specs=[
            pl.BlockSpec((te, d), lambda i: (i, 0)),
            pl.BlockSpec((te, d), lambda i: (i, 0)),
            pl.BlockSpec((d, d), lambda i: (0, 0)),
            pl.BlockSpec((d, 2 * d), lambda i: (0, 0)),
            pl.BlockSpec((heads, d), lambda i: (0, 0)),
        ],
        out_specs=(pl.BlockSpec((heads, te), lambda i: (0, i)),
                   pl.BlockSpec((te, d), lambda i: (i, 0))),
        compiler_params=pltpu.CompilerParams(
            dimension_semantics=("parallel",),
            vmem_limit_bytes=VMEM_LIMIT),
    )(row_p, col_p, wq, wkv, head_mask)
    return exp_he[:, :e], v[:e]


def _make_head_mask(d=EMB_DIM, heads=HEADS):
    hd = d // heads
    m = np.zeros((heads, d), np.float32)
    for h in range(heads):
        m[h, h * hd:(h + 1) * hd] = 1.0
    return jnp.asarray(m)


# ------------------------------ LocalGraph forward ---------------------------
def local_graph_forward(params, adj_rows, adj_cols, dists_array, anchor_ids,
                        embeds, num_nodes, add_rate=0.01, seed=0):
    # --- PNNLayer (Pallas hot path) ---
    # Layout contract: dists_array is [N, A]; transpose mirrors the reference.
    dists_array = jnp.asarray(dists_array, jnp.float32)
    if dists_array.shape[0] != embeds.shape[0]:
        dists_array = dists_array.T
    pnn_emb = pnn_forward(dists_array, embeds, anchor_ids,
                          params["w_hidden"], params["b_hidden"])     # bf16 [N, D]

    # --- graph augmentation (host glue; mirrors the numpy/scipy path) ---
    rows_np = np.asarray(adj_rows)
    cols_np = np.asarray(adj_cols)
    rng = np.random.RandomState(seed)
    n_add = int(len(rows_np) * add_rate)
    tmp_rows = rng.choice(rows_np, size=n_add)
    tmp_cols = rng.choice(cols_np, size=n_add)
    diag = np.arange(num_nodes, dtype=rows_np.dtype)
    new_rows = np.concatenate([tmp_rows, tmp_cols, diag, rows_np])
    new_cols = np.concatenate([tmp_cols, tmp_rows, diag, cols_np])
    # csr_matrix + tocoo + coalesce == sorted dedup with summed unit values
    enc = new_rows.astype(np.int64) * num_nodes + new_cols.astype(np.int64)
    uniq, counts = np.unique(enc, return_counts=True)
    ded_rows = (uniq // num_nodes).astype(np.int32)
    ded_cols = (uniq % num_nodes).astype(np.int32)
    ded_vals = counts.astype(np.float32)

    # --- GTLayer: per-edge projections + attention logits in Pallas ---
    e = ded_rows.shape[0]
    # TODO(synk): the per-edge embedding gathers stay in XLA; fusing them
    # into the kernel (scalar-prefetch indices + in-VMEM take / DMA gather)
    # would cut GT-path HBM traffic further.
    row_emb = pnn_emb[jnp.asarray(ded_rows)]                          # [E, D] bf16
    col_emb = pnn_emb[jnp.asarray(ded_cols)]
    wq = params["wq"].astype(jnp.bfloat16)
    wkv = jnp.concatenate([params["wk"], params["wv"]],
                          axis=1).astype(jnp.bfloat16)                # [D, 2D]
    head_mask = _make_head_mask(EMB_DIM, HEADS)
    exp_att_he, v = gt_edge_forward(row_emb, col_emb, wq, wkv, head_mask)
    exp_att = exp_att_he.T                                            # [E, H]

    rows_j = jnp.asarray(ded_rows)
    # TODO(synk): the GTLayer index_add_ scatter-add has no clean Pallas
    # equivalent (data-dependent scatter); done with jax.ops.segment_sum.
    att_norm = jax.ops.segment_sum(exp_att, rows_j,
                                   num_segments=num_nodes)[rows_j]
    att = exp_att / (att_norm + 1e-8)                                 # [E, H]
    # NOTE: gt_layer's embeds_l2 (scatter-add of att * v) is discarded by
    # LocalGraph.forward, so it is not computed here (dead code removal).
    del v

    att_edge = jnp.sum(att, axis=-1)                                  # [E]
    add_adj = (jnp.asarray(ded_rows), jnp.asarray(ded_cols),
               jnp.asarray(ded_vals))
    return att_edge, add_adj


def init_params(key, d=EMB_DIM):
    k1, k2, k3, k4 = jax.random.split(key, 4)
    scale = 0.1
    # NOTE: PNNLayer.linear_out / linear_out_position are defined in __init__
    # but never used in the forward path, so they are not instantiated here.
    return {
        "w_hidden": jax.random.normal(k1, (2 * d, d), jnp.float32) * scale,
        "b_hidden": jnp.zeros((1, d), jnp.float32),
        "wq": jax.random.normal(k2, (d, d), jnp.float32) * scale,
        "wk": jax.random.normal(k3, (d, d), jnp.float32) * scale,
        "wv": jax.random.normal(k4, (d, d), jnp.float32) * scale,
    }


if __name__ == "__main__":
    key = jax.random.PRNGKey(0)
    num_users, num_items = 32, 32
    n_nodes = num_users + num_items                      # 64
    k_emb, k_dist, k_anc, k_edge, k_param = jax.random.split(key, 5)

    embeds = jax.random.normal(k_emb, (n_nodes, EMB_DIM), jnp.float32)
    dists_array = jax.random.uniform(k_dist, (n_nodes, ANCHOR_NUM), jnp.float32)
    anchor_ids = jax.random.randint(k_anc, (ANCHOR_NUM,), 0, n_nodes)

    # base user-item adjacency indices in the joint (user+item) index space
    num_edges = 200
    ku, ki = jax.random.split(k_edge)
    adj_rows = np.asarray(jax.random.randint(ku, (num_edges,), 0, num_users),
                          np.int32)
    adj_cols = np.asarray(jax.random.randint(ki, (num_edges,), num_users,
                                             n_nodes), np.int32)

    params = init_params(k_param)
    att_edge, add_adj = local_graph_forward(params, adj_rows, adj_cols,
                                            dists_array, anchor_ids,
                                            embeds, n_nodes)
    jax.block_until_ready(att_edge)
    jax.block_until_ready(add_adj)
    assert att_edge.shape[0] == add_adj[0].shape[0]
    print("KERNEL_OK")
</pallas_src>

<mosaic_0001>
module attributes {stable_mosaic.version = 11 : i64} {
  func.func @_pnn_kernel(%arg0: i32, %arg1: memref<64x32xbf16, #tpu.memory_space<vmem>>, %arg2: memref<64x32xbf16, #tpu.memory_space<vmem>>, %arg3: memref<32x32xbf16, #tpu.memory_space<vmem>>, %arg4: memref<32x32xbf16, #tpu.memory_space<vmem>>, %arg5: memref<32x32xbf16, #tpu.memory_space<vmem>>, %arg6: memref<1x32xf32, #tpu.memory_space<vmem>>, %arg7: memref<64x32xbf16, #tpu.memory_space<vmem>>) attributes {dimension_semantics = [#tpu.dimension_semantics<parallel>], iteration_bounds = array<i64: 1>, scalar_prefetch = 0 : i64, scratch_operands = 0 : i64, tpu.core_type = #tpu.core_type<tc>, window_params = [{transform_indices = @transform_0, window_bounds = array<i64: 64, 32>}, {transform_indices = @transform_1, window_bounds = array<i64: 64, 32>}, {pipeline_mode = #tpu.pipeline_mode<synchronous>, transform_indices = @transform_2, window_bounds = array<i64: 32, 32>}, {pipeline_mode = #tpu.pipeline_mode<synchronous>, transform_indices = @transform_3, window_bounds = array<i64: 32, 32>}, {pipeline_mode = #tpu.pipeline_mode<synchronous>, transform_indices = @transform_4, window_bounds = array<i64: 32, 32>}, {pipeline_mode = #tpu.pipeline_mode<synchronous>, transform_indices = @transform_5, window_bounds = array<i64: 1, 32>}, {transform_indices = @transform_6, window_bounds = array<i64: 64, 32>}]} {
    %c0 = arith.constant 0 : index
    %c0_0 = arith.constant 0 : index
    %0 = vector.load %arg1[%c0, %c0_0] : memref<64x32xbf16, #tpu.memory_space<vmem>>, vector<64x32xbf16>
    %c0_1 = arith.constant 0 : index
    %c0_2 = arith.constant 0 : index
    %1 = vector.load %arg3[%c0_1, %c0_2] : memref<32x32xbf16, #tpu.memory_space<vmem>>, vector<32x32xbf16>
    %cst = arith.constant dense<0.000000e+00> : vector<64x32xf32>
    %2 = tpu.matmul %0, %1, %cst {dimension_numbers = #tpu.dot_dimension_numbers<[1], [0], [0], [1], [0, 0, 1, 1], [], []>} : vector<64x32xbf16>, vector<32x32xbf16>, vector<64x32xf32> -> vector<64x32xf32>
    %cst_3 = arith.constant 3.125000e-02 : f32
    %3 = vector.broadcast %cst_3 : f32 to vector<64x32xf32>
    %4 = arith.mulf %2, %3 : vector<64x32xf32>
    %5 = arith.truncf %4 : vector<64x32xf32> to vector<64x32xbf16>
    %c0_4 = arith.constant 0 : index
    %c0_5 = arith.constant 0 : index
    %6 = vector.load %arg4[%c0_4, %c0_5] : memref<32x32xbf16, #tpu.memory_space<vmem>>, vector<32x32xbf16>
    %cst_6 = arith.constant dense<0.000000e+00> : vector<64x32xf32>
    %7 = tpu.matmul %5, %6, %cst_6 {dimension_numbers = #tpu.dot_dimension_numbers<[1], [0], [0], [1], [0, 0, 1, 1], [], []>} : vector<64x32xbf16>, vector<32x32xbf16>, vector<64x32xf32> -> vector<64x32xf32>
    %c0_7 = arith.constant 0 : index
    %c0_8 = arith.constant 0 : index
    %8 = vector.load %arg2[%c0_7, %c0_8] : memref<64x32xbf16, #tpu.memory_space<vmem>>, vector<64x32xbf16>
    %c0_9 = arith.constant 0 : index
    %c0_10 = arith.constant 0 : index
    %9 = vector.load %arg5[%c0_9, %c0_10] : memref<32x32xbf16, #tpu.memory_space<vmem>>, vector<32x32xbf16>
    %cst_11 = arith.constant dense<0.000000e+00> : vector<64x32xf32>
    %10 = tpu.matmul %8, %9, %cst_11 {dimension_numbers = #tpu.dot_dimension_numbers<[1], [0], [0], [1], [0, 0, 1, 1], [], []>} : vector<64x32xbf16>, vector<32x32xbf16>, vector<64x32xf32> -> vector<64x32xf32>
    %11 = arith.addf %7, %10 : vector<64x32xf32>
    %c0_12 = arith.constant 0 : index
    %c0_13 = arith.constant 0 : index
    %12 = vector.load %arg6[%c0_12, %c0_13] : memref<1x32xf32, #tpu.memory_space<vmem>>, vector<1x32xf32>
    %13 = vector.broadcast %12 : vector<1x32xf32> to vector<64x32xf32>
    %14 = arith.addf %11, %13 : vector<64x32xf32>
    %15 = arith.truncf %14 : vector<64x32xf32> to vector<64x32xbf16>
    %c0_14 = arith.constant 0 : index
    %c0_15 = arith.constant 0 : index
    %16 = vector.load %arg7[%c0_14, %c0_15] : memref<64x32xbf16, #tpu.memory_space<vmem>>, vector<64x32xbf16>
    tpu.vector_store %arg7[%c0_14, %c0_15], %15 {strides = array<i32>} : memref<64x32xbf16, #tpu.memory_space<vmem>>, vector<64x32xbf16>,
    return
  }
  func.func @transform_0(%arg0: i32) -> (i32, i32) {
    %c0_i32 = arith.constant 0 : i32
    %c0_i32_0 = arith.constant 0 : i32
    return %arg0, %c0_i32 : i32, i32
  }
  func.func @transform_1(%arg0: i32) -> (i32, i32) {
    %c0_i32 = arith.constant 0 : i32
    %c0_i32_0 = arith.constant 0 : i32
    return %arg0, %c0_i32 : i32, i32
  }
  func.func @transform_2(%arg0: i32) -> (i32, i32) {
    %c0_i32 = arith.constant 0 : i32
    %c0_i32_0 = arith.constant 0 : i32
    %c0_i32_1 = arith.constant 0 : i32
    return %c0_i32, %c0_i32_0 : i32, i32
  }
  func.func @transform_3(%arg0: i32) -> (i32, i32) {
    %c0_i32 = arith.constant 0 : i32
    %c0_i32_0 = arith.constant 0 : i32
    %c0_i32_1 = arith.constant 0 : i32
    return %c0_i32, %c0_i32_0 : i32, i32
  }
  func.func @transform_4(%arg0: i32) -> (i32, i32) {
    %c0_i32 = arith.constant 0 : i32
    %c0_i32_0 = arith.constant 0 : i32
    %c0_i32_1 = arith.constant 0 : i32
    return %c0_i32, %c0_i32_0 : i32, i32
  }
  func.func @transform_5(%arg0: i32) -> (i32, i32) {
    %c0_i32 = arith.constant 0 : i32
    %c0_i32_0 = arith.constant 0 : i32
    %c0_i32_1 = arith.constant 0 : i32
    return %c0_i32, %c0_i32_0 : i32, i32
  }
  func.func @transform_6(%arg0: i32) -> (i32, i32) {
    %c0_i32 = arith.constant 0 : i32
    %c0_i32_0 = arith.constant 0 : i32
    return %arg0, %c0_i32 : i32, i32
  }
}

</mosaic_0001>

<bundles_post_ra>
// kernel: tpu_custom_call.1
= control target key start
LH: loop header
LB: loop body
LE: loop exit
PB: predicated region body
PF: predicated region fallthrough
CT: control target
= control target key end

     0   :  { %vm68_vm0 = vcmask 261120   ;;  %vm419_vm1 = vcmask 257024   ;;  %s671_s2 = inlined_call_operand.vmem [shape: bf16[32,32], index: 2, kind: input, shape index: {}]   ;;  %s672_s0 = inlined_call_operand.vmem [shape: bf16[64,32], index: 0, kind: input, shape index: {}]   ;;  %s673_s4 = inlined_call_operand.vmem [shape: bf16[32,32], index: 4, kind: input, shape index: {}]   ;;  %s674_s3 = inlined_call_operand.vmem [shape: bf16[32,32], index: 3, kind: input, shape index: {}]   ;;  %s675_s1 = inlined_call_operand.vmem [shape: bf16[64,32], index: 1, kind: input, shape index: {}]   ;;  %s676_s5 = inlined_call_operand.vmem [shape: f32[1,32], index: 5, kind: input, shape index: {}]   ;;  %s677_s6 = inlined_call_operand.vmem [shape: bf16[64,32], index: 6, kind: output, shape index: {}]  }
   0x1   :  { %v533_v0 = vld [vmem:[%s671_s2 + $0x8] sm:$0xff]   ;;  %v534_v1 = vld [vmem:[%s671_s2] sm:$0xff]   ;;  %v537_v4 = vld [vmem:[%s672_s0 + $0x10] sm:$0xff]  }
   0x2   :  { %493 = vmatprep.subr.bf16.mxu0 %v533_v0  ;;  %529 = vmatprep.subr.bf16.mxu1 %v533_v0  ;;  %v535_v2 = vld [vmem:[%s672_s0] sm:$0xff]   ;;  %v536_v3 = vld [vmem:[%s672_s0 + $0x8] sm:$0xff]   ;;  %v538_v5 = vld [vmem:[%s672_s0 + $0x18] sm:$0xff]  }
   0x3   :  { %494 = vmatpush3.bf16.msra.mxu0 %v533_v0  ;;  %531 = vmatpush3.bf16.msra.mxu1 %v533_v0  ;;  %v539_v6 = vld [vmem:[%s673_s4 + $0x8] sm:$0xff]   ;;  %v540_v7 = vld [vmem:[%s673_s4] sm:$0xff]   ;;  %v545_v12 = vld [vmem:[%s675_s1 + $0x10] sm:$0xff]  }
   0x4   :  { %495 = vmatprep.subr.bf16.mxu0 %v534_v1  ;;  %530 = vmatprep.subr.bf16.mxu1 %v534_v1  ;;  %v541_v8 = vld [vmem:[%s674_s3 + $0x8] sm:$0xff]   ;;  %v542_v9 = vld [vmem:[%s675_s1] sm:$0xff]   ;;  %v546_v13 = vld [vmem:[%s675_s1 + $0x18] sm:$0xff]  }
   0x5   :  { %497 = vmatprep.mubr.msk.bf16.mxu0 %vm68_vm0, %v535_v2  ;;  %501 = vmatprep.mubr.msk.bf16.mxu1 %vm68_vm0, %v537_v4  ;;  %v543_v10 = vld [vmem:[%s675_s1 + $0x8] sm:$0xff]   ;;  %v544_v11 = vld [vmem:[%s674_s3] sm:$0xff]  }
   0x6   :  { %v458_v39 = vld [vmem:[%s676_s5] ss:$0 sm:$0xff] }
   0x7   :  { %496 = vmatpush3.bf16.msra.mxu0 %v534_v1  ;;  %532 = vmatpush3.bf16.msra.mxu1 %v534_v1 }
   0x8   :  { %505 = vmatprep.subr.bf16.mxu1 %v539_v6  ;;  %517 = vmatprep.subr.bf16.mxu0 %v541_v8 }
   0xa   :  { %498 = vmatmul.mubr.msk.bf16.vlgmr.msra.gmra.mxu0 %vm68_vm0, %v536_v3  ;;  %502 = vmatmul.mubr.msk.bf16.vlgmr.msra.gmra.mxu1 %vm68_vm0, %v538_v5 }
   0xb   :  { %506 = vmatpush3.bf16.msra.mxu1 %v539_v6  ;;  %518 = vmatpush3.bf16.msra.mxu0 %v541_v8 }
   0xc   :  { %507 = vmatprep.subr.bf16.mxu1 %v540_v7  ;;  %509 = vmatprep.mubr.msk.bf16.mxu1 %vm68_vm0, %v542_v9 }
   0xd   :  { %519 = vmatprep.subr.bf16.mxu0 %v544_v11 }
   0xf   :  { %508 = vmatpush3.bf16.msra.mxu1 %v540_v7  ;;  %520 = vmatpush3.bf16.msra.mxu0 %v544_v11 }
  0x12   :  { %510 = vmatmul.mubr.msk.bf16.vlgmr.msra.gmra.mxu1 %vm68_vm0, %v543_v10 }
  0x13   :  { %513 = vmatprep.mubr.msk.bf16.mxu1 %vm68_vm0, %v545_v12 }
  0x1a   :  { %514 = vmatmul.mubr.msk.bf16.gmra.mxu1 %vm68_vm0, %v546_v13 }
  0xca   :  { %v499_v14 = vpop.f32.mrf.mxu0  ;;  %v503_v15 = vpop.f32.mrf.mxu1 }
  0xcb   :  { %v148_v27 = vmul.f32 0.03125, %v499_v14  ;;  %v152_v31 = vmul.f32 0.03125, %v503_v15 }
  0xcc   :  { %v115_v16 = vpop.f32.mrf.mxu0  ;;  %v131_v17 = vpop.f32.mrf.mxu1 }
  0xcd   :  { %v150_v20 = vmul.f32 0.03125, %v131_v17  ;;  %v146_v24 = vmul.f32 0.03125, %v115_v16 }
  0xce   :  { %v500_v18 = vpop.f32.mrf.mxu0  ;;  %v504_v19 = vpop.f32.mrf.mxu1 }
  0xcf   :  { %v149_v21 = vmul.f32 0.03125, %v500_v18  ;;  %v153_v32 = vmul.f32 0.03125, %v504_v19 }
  0xd0   :  { %v118_v22 = vpop.f32.mrf.mxu0  ;;  %v134_v23 = vpop.f32.mrf.mxu1 }
  0xd1   :  { %v147_v25 = vmul.f32 0.03125, %v118_v22  ;;  %v151_v26 = vmul.f32 0.03125, %v134_v23  ;;  %v155_v30 = vpack.c.bf16 %v149_v21, %v148_v27  ;;  %v157_v33 = vpack.c.bf16 %v153_v32, %v152_v31 }
  0xd2   :  { %v511_v34 = vpop.f32.mrf.mxu1 }
  0xd3   :  { %v154_v28 = vpack.c.bf16 %v147_v25, %v146_v24  ;;  %v156_v29 = vpack.c.bf16 %v151_v26, %v150_v20 }
  0xd4   :  { %v252_v35 = vpop.f32.mrf.mxu1 }
  0xd5   :  { %521 = vmatprep.mubr.msk.bf16.mxu0 %vm68_vm0, %v154_v28 }
  0xd6   :  { %522 = vmatmul.mubr.msk.bf16.vlgmr.msra.gmra.mxu0 %vm68_vm0, %v155_v30  ;;  %v512_v36 = vpop.f32.mrf.mxu1 }
  0xd7   :  { %525 = vmatprep.mubr.msk.bf16.mxu0 %vm68_vm0, %v156_v29 }
  0xd8   :  { %v255_v37 = vpop.f32.mrf.mxu1 }
  0xda   :  { %v515_v41 = vpop.f32.mrf.mxu1 }
  0xdc   :  { %v268_v49 = vpop.f32.mrf.mxu1 }
  0xde   :  { %526 = vmatmul.mubr.msk.bf16.gmra.mxu0 %vm68_vm0, %v157_v33  ;;  %v516_v58 = vpop.f32.mrf.mxu1 }
  0xe0   :  { %v271_v3 = vpop.f32.mrf.mxu1 }
 0x196   :  { %v523_v38 = vpop.f32.mrf.mxu0 }
 0x197   :  { %v350_v40 = vadd.f32 %v523_v38, %v511_v34 }
 0x198   :  { %v341_v42 = vpop.f32.mrf.mxu0 }
 0x199   :  { %v381_v43 = vadd.f32 %v458_v39, %v350_v40  ;;  %v342_v44 = vadd.f32 %v341_v42, %v252_v35 }
 0x19a   :  { %v524_v45 = vpop.f32.mrf.mxu0 }
 0x19b   :  { %v469_v46 = vpack.c.bf16 %v381_v43, %v381_v43  ;;  %v379_v47 = vadd.f32 %v458_v39, %v342_v44  ;;  %v353_v48 = vadd.f32 %v524_v45, %v512_v36 }
 0x19c   :  { %v344_v50 = vpop.f32.mrf.mxu0 }
 0x19d   :  { %422 = vst.msk [vmem:[%s677_s6 + $0x8] sm:$0xf] %vm419_vm1, %v469_v46  ;;  %v467_v51 = vpack.c.bf16 %v379_v47, %v379_v47  ;;  %v382_v52 = vadd.f32 %v458_v39, %v353_v48  ;;  %v345_v53 = vadd.f32 %v344_v50, %v255_v37 }
 0x19e   :  { %v527_v54 = vpop.f32.mrf.mxu0 }
 0x19f   :  { %420 = vst.msk [vmem:[%s677_s6] sm:$0xf] %vm419_vm1, %v467_v51  ;;  %v470_v55 = vpack.c.bf16 %v382_v52, %v382_v52  ;;  %v380_v56 = vadd.f32 %v458_v39, %v345_v53  ;;  %v366_v57 = vadd.f32 %v527_v54, %v515_v41 }
 0x1a0   :  { %v357_v59 = vpop.f32.mrf.mxu0 }
 0x1a1   :  { %423 = vst.msk [vmem:[%s677_s6 + $0xc] sm:$0xf] %vm419_vm1, %v470_v55  ;;  %v468_v60 = vpack.c.bf16 %v380_v56, %v380_v56  ;;  %v385_v61 = vadd.f32 %v458_v39, %v366_v57  ;;  %v358_v62 = vadd.f32 %v357_v59, %v268_v49 }
 0x1a2   :  { %v528_v63 = vpop.f32.mrf.mxu0 }
 0x1a3   :  { %421 = vst.msk [vmem:[%s677_s6 + $0x4] sm:$0xf] %vm419_vm1, %v468_v60  ;;  %v473_v0 = vpack.c.bf16 %v385_v61, %v385_v61  ;;  %v383_v1 = vadd.f32 %v458_v39, %v358_v62  ;;  %v369_v2 = vadd.f32 %v528_v63, %v516_v58 }
 0x1a4   :  { %v360_v4 = vpop.f32.mrf.mxu0 }
 0x1a5   :  { %426 = vst.msk [vmem:[%s677_s6 + $0x18] sm:$0xf] %vm419_vm1, %v473_v0  ;;  %v471_v5 = vpack.c.bf16 %v383_v1, %v383_v1  ;;  %v386_v6 = vadd.f32 %v458_v39, %v369_v2  ;;  %v361_v7 = vadd.f32 %v360_v4, %v271_v3 }
 0x1a7   :  { %424 = vst.msk [vmem:[%s677_s6 + $0x10] sm:$0xf] %vm419_vm1, %v471_v5  ;;  %v474_v8 = vpack.c.bf16 %v386_v6, %v386_v6  ;;  %v384_v9 = vadd.f32 %v458_v39, %v361_v7 }
 0x1a9   :  { %427 = vst.msk [vmem:[%s677_s6 + $0x1c] sm:$0xf] %vm419_vm1, %v474_v8  ;;  %v472_v10 = vpack.c.bf16 %v384_v9, %v384_v9 }
 0x1ab   :  { %425 = vst.msk [vmem:[%s677_s6 + $0x14] sm:$0xf] %vm419_vm1, %v472_v10 }

</bundles_post_ra>
